<compile_context>
chip_gen: v6e
topology: v6e:2x2x1
jax: 0.10.0
libtpu: 0.0.40
codegen_flags: <defaults>
</compile_context>

<pallas_src>
import functools

import jax
import jax.numpy as jnp
from jax.experimental import pallas as pl
from jax.experimental.pallas import tpu as pltpu

LANE = 128
SUBLANE = 8
_BLOCK_BYTES = 4 * 1024 * 1024       # ~4 MiB per streamed operand per DMA
_VMEM_SLACK = 2 * 1024 * 1024
_VMEM_FLOOR = 16 * 1024 * 1024
_VMEM_CAP = 64 * 1024 * 1024         # stay within v7x physical VMEM


# ----------------------------- planning helpers ------------------------------

def _plan_cols(n):
    """Pick the lane-dense column count (copy-free when n % cols == 0)."""
    for cols in (1024, 512, 256, LANE):
        if n % cols == 0:
            return cols
    return LANE                      # ragged: a < 128 element tail remains


def _pick_block_rows(rows, cols, itemsize, block_bytes):
    """Rows per block so each operand DMA is ~block_bytes; 32-sublane aligned."""
    target = max(1, block_bytes // (cols * itemsize))
    if target >= rows:
        return rows
    br = max(32, (target // 32) * 32)    # 32 covers (8,128)/(16,128)/(32,128)
    return min(br, rows)


@functools.lru_cache(maxsize=1)
def _num_tensorcores():
    """Best-effort TensorCore count; 1 is always a safe fallback."""
    try:
        info = pltpu.get_tpu_info()
        for attr in ("num_cores", "core_count", "num_tensorcores",
                     "tensorcores_per_chip", "cores_per_chip"):
            v = getattr(info, attr, None)
            if isinstance(v, int) and v > 0:
                return v
    except Exception:
        pass
    try:
        kind = jax.devices()[0].device_kind.lower()
        if "v7" in kind:
            return 2
    except Exception:
        pass
    return 1


def _vmem_limit(byte_total):
    return int(min(_VMEM_CAP, max(_VMEM_FLOOR, byte_total + _VMEM_SLACK)))


# ----------------------------- kernels ---------------------------------------

def _make_sum_kernel(block_rows, cols, rows, row_blocks, blocks_per_split,
                     need_mask, weighted):
    vreg_acc = (block_rows % SUBLANE == 0)

    def _partial(d):
        if vreg_acc:
            # sublane-split reshape -> pure VPU adds into an (8, cols) acc
            return d.reshape(block_rows // SUBLANE, SUBLANE, cols).sum(axis=0)
        return jnp.sum(d, axis=0, keepdims=True)

    def kernel(*refs):
        if weighted:
            p_ref, t_ref, w_ref, out_ref, acc_ref = refs
        else:
            p_ref, t_ref, out_ref, acc_ref = refs
        c = pl.program_id(0)
        i = pl.program_id(1)

        @pl.when(i == 0)
        def _():
            acc_ref[...] = jnp.zeros_like(acc_ref)

        d = jnp.abs(p_ref[...].astype(jnp.float32)
                    - t_ref[...].astype(jnp.float32))
        if weighted:
            d = d * w_ref[...].astype(jnp.float32)

        if need_mask:
            g = c * blocks_per_split + i          # logical (unclamped) block
            is_edge = g >= row_blocks - 1         # ragged last block + clamped re-reads

            @pl.when(jnp.logical_not(is_edge))
            def _():
                acc_ref[...] += _partial(d)

            @pl.when(is_edge)
            def _():
                row_ids = g * block_rows + jax.lax.broadcasted_iota(
                    jnp.int32, (block_rows, cols), 0)
                # jnp.where (select) does not propagate NaN/Inf from padding.
                acc_ref[...] += _partial(jnp.where(row_ids < rows, d, 0.0))
        else:
            acc_ref[...] += _partial(d)

        @pl.when(i == pl.num_programs(1) - 1)
        def _():
            # single cross-lane/sublane reduction, broadcast into this
            # split's tile-aligned (8,128) partial-sum block.
            out_ref[...] = jnp.full((SUBLANE, LANE), jnp.sum(acc_ref[...]),
                                    jnp.float32)

    return kernel, (SUBLANE if vreg_acc else 1)


def _make_ew_kernel(weighted, loss_weight_static):
    def kernel(*refs):
        if weighted:
            p_ref, t_ref, w_ref, o_ref = refs
        else:
            p_ref, t_ref, o_ref = refs
        d = jnp.abs(p_ref[...].astype(jnp.float32)
                    - t_ref[...].astype(jnp.float32))
        if weighted:
            d = d * w_ref[...].astype(jnp.float32)
        if loss_weight_static is not None and loss_weight_static != 1.0:
            d = d * jnp.float32(loss_weight_static)
        o_ref[...] = d.astype(o_ref.dtype)
    return kernel


# ----------------------------- pallas_call drivers ---------------------------

def _l1_reduce(p2d, t2d, w2d, block_bytes, num_splits_override=None):
    rows, cols = p2d.shape
    operands = [p2d, t2d] + ([w2d] if w2d is not None else [])
    max_itemsize = max(o.dtype.itemsize for o in operands)
    block_rows = _pick_block_rows(rows, cols, max_itemsize, block_bytes)
    row_blocks = pl.cdiv(rows, block_rows)

    num_tc = _num_tensorcores()
    if num_splits_override is not None:
        num_splits = num_splits_override
    else:
        num_splits = num_tc if (num_tc > 1 and row_blocks >= num_tc) else 1
    num_splits = max(1, min(num_splits, row_blocks))
    blocks_per_split = pl.cdiv(row_blocks, num_splits)
    need_mask = (num_splits * blocks_per_split * block_rows) != rows

    weighted = w2d is not None
    kernel, acc_rows = _make_sum_kernel(block_rows, cols, rows, row_blocks,
                                        blocks_per_split, need_mask, weighted)

    def in_map(c, i):
        g = c * blocks_per_split + i
        return (jnp.minimum(g, row_blocks - 1), 0)   # clamp; masked in-kernel

    in_specs = [pl.BlockSpec((block_rows, cols), in_map) for _ in operands]

    # Explicit scoped-VMEM budget: double-buffered streams + out + scratch.
    stream_bytes = sum(2 * block_rows * cols * o.dtype.itemsize for o in operands)
    out_buf_bytes = 2 * SUBLANE * LANE * 4
    scratch_bytes = acc_rows * cols * 4
    vmem_limit = _vmem_limit(stream_bytes + out_buf_bytes + scratch_bytes)

    in_bytes = sum(o.size * o.dtype.itemsize for o in operands)
    cost = pl.CostEstimate(
        flops=3 * rows * cols, transcendentals=0,
        bytes_accessed=in_bytes + num_splits * SUBLANE * LANE * 4)

    partials = pl.pallas_call(
        kernel,
        out_shape=jax.ShapeDtypeStruct((num_splits * SUBLANE, LANE), jnp.float32),
        grid_spec=pltpu.PrefetchScalarGridSpec(
            num_scalar_prefetch=0,
            grid=(num_splits, blocks_per_split),
            in_specs=in_specs,
            out_specs=pl.BlockSpec((SUBLANE, LANE), lambda c, i: (c, 0)),
            scratch_shapes=[pltpu.VMEM((acc_rows, cols), jnp.float32)],
        ),
        compiler_params=pltpu.CompilerParams(
            dimension_semantics=("parallel", "arbitrary"),
            vmem_limit_bytes=vmem_limit),
        cost_estimate=cost,
    )(*operands)

    # one partial scalar per split (broadcast across its (8,128) block)
    return jnp.sum(partials[::SUBLANE, 0])


def _l1_none(p2d, t2d, w2d, loss_weight_static, out_dtype, block_bytes):
    rows, cols = p2d.shape
    operands = [p2d, t2d] + ([w2d] if w2d is not None else [])
    max_itemsize = max(max(o.dtype.itemsize for o in operands),
                       jnp.dtype(out_dtype).itemsize)
    block_rows = _pick_block_rows(rows, cols, max_itemsize, block_bytes)
    grid = (pl.cdiv(rows, block_rows),)

    weighted = w2d is not None
    kernel = _make_ew_kernel(weighted, loss_weight_static)
    spec = pl.BlockSpec((block_rows, cols), lambda i: (i, 0))

    stream_bytes = sum(2 * block_rows * cols * o.dtype.itemsize for o in operands)
    out_buf_bytes = 2 * block_rows * cols * jnp.dtype(out_dtype).itemsize
    vmem_limit = _vmem_limit(stream_bytes + out_buf_bytes)

    in_bytes = sum(o.size * o.dtype.itemsize for o in operands)
    out_bytes = rows * cols * jnp.dtype(out_dtype).itemsize
    cost = pl.CostEstimate(flops=3 * rows * cols, transcendentals=0,
                           bytes_accessed=in_bytes + out_bytes)

    return pl.pallas_call(
        kernel,
        out_shape=jax.ShapeDtypeStruct((rows, cols), out_dtype),
        grid_spec=pltpu.PrefetchScalarGridSpec(
            num_scalar_prefetch=0,
            grid=grid,
            in_specs=[spec] * len(operands),
            out_specs=spec,
        ),
        compiler_params=pltpu.CompilerParams(
            dimension_semantics=("parallel",),
            vmem_limit_bytes=vmem_limit),
        cost_estimate=cost,
    )(*operands)


# ----------------------------- public wrapper ---------------------------------

def l1_loss_pallas(pred, target, weight=None, loss_weight=1.0,
                   reduction="mean", block_bytes=_BLOCK_BYTES,
                   num_splits=None):
    if reduction not in ("none", "mean", "sum"):
        raise ValueError(f"Unsupported reduction mode: {reduction}")
    pred = jnp.asarray(pred)
    target = jnp.asarray(target)
    assert pred.shape == target.shape
    orig_shape = pred.shape
    n_elem = pred.size

    # Fold loss_weight into the kernel only when it's a static Python number.
    lw_static = loss_weight if isinstance(loss_weight, (int, float)) else None

    # Fold scalar / size-1 weights instead of streaming a 3rd full tensor.
    scalar_w = None
    if weight is not None:
        weight = jnp.asarray(weight)
        if weight.size == 1:
            scalar_w = weight.reshape(()).astype(jnp.float32)
            weight = None
        elif weight.shape != pred.shape:
            # TODO(synk): stream compact broadcast weights via their own
            # BlockSpec/index_map instead of materializing a pred-sized copy.
            weight = jnp.broadcast_to(weight, pred.shape)

    if weight is not None:
        out_dtype = jnp.result_type(pred.dtype, target.dtype, weight.dtype)
    else:
        out_dtype = jnp.result_type(pred.dtype, target.dtype)

    cols = _plan_cols(n_elem)
    n_main = (n_elem // cols) * cols
    n_tail = n_elem - n_main

    p_flat = pred.reshape(-1)
    t_flat = target.reshape(-1)
    w_flat = weight.reshape(-1) if weight is not None else None

    def _main_2d(x):
        # copy-free reshape when n_tail == 0; prefix slice otherwise.
        # TODO(synk): ragged sizes still pay one XLA prefix-slice copy per
        # operand (the full jnp.pad round trip was removed).
        xm = x if n_tail == 0 else x[:n_main]
        return xm.reshape(n_main // cols, cols)

    def _tail_diff():
        td = jnp.abs(p_flat[n_main:].astype(jnp.float32)
                     - t_flat[n_main:].astype(jnp.float32))
        if w_flat is not None:
            td = td * w_flat[n_main:].astype(jnp.float32)
        return td

    # --------------------------- reduction = 'none' ---------------------------
    if reduction == "none":
        if n_main:
            p2d = _main_2d(p_flat)
            t2d = _main_2d(t_flat)
            w2d = _main_2d(w_flat) if w_flat is not None else None
            main_out = _l1_none(p2d, t2d, w2d, lw_static, out_dtype,
                                block_bytes).reshape(-1)
        else:
            main_out = None

        if n_tail:
            tail = _tail_diff()
            if lw_static is not None and lw_static != 1.0:
                tail = tail * jnp.float32(lw_static)
            tail = tail.astype(out_dtype)
            out_flat = tail if main_out is None else jnp.concatenate(
                [main_out, tail])
        else:
            out_flat = main_out

        out = out_flat.reshape(orig_shape)
        if scalar_w is not None:
            out = out * scalar_w.astype(out_dtype)
        if lw_static is None:                       # dynamic loss_weight
            out = out * jnp.asarray(loss_weight).astype(out_dtype)
        return out

    # --------------------------- reduction = sum / mean -----------------------
    if n_main:
        p2d = _main_2d(p_flat)
        t2d = _main_2d(t_flat)
        w2d = _main_2d(w_flat) if w_flat is not None else None
        total = _l1_reduce(p2d, t2d, w2d, block_bytes,
                           num_splits_override=num_splits)
    else:
        total = jnp.float32(0.0)

    if n_tail:
        total = total + jnp.sum(_tail_diff())

    if scalar_w is not None:
        total = total * scalar_w
    total = total * jnp.asarray(loss_weight, dtype=jnp.float32)
    if reduction == "mean":
        # basicsr/PyTorch convention: divide by total #elements (even when an
        # elementwise weight is given), not by sum(weight).
        total = total / jnp.float32(n_elem)
    return total.astype(out_dtype)


# ----------------------------- test -------------------------------------------

if __name__ == "__main__":
    key = jax.random.PRNGKey(0)
    k1, k2, k3 = jax.random.split(key, 3)

    N, C, H, W = 2, 4, 16, 16
    pred = jax.random.normal(k1, (N, C, H, W), dtype=jnp.float32)
    target = jax.random.normal(k2, (N, C, H, W), dtype=jnp.float32)
    weight = jax.random.uniform(k3, (N, C, H, W), dtype=jnp.float32)
    loss_weight = 0.5

    out_mean = l1_loss_pallas(pred, target, loss_weight=loss_weight, reduction="mean")
    ref_mean = loss_weight * jnp.mean(jnp.abs(pred - target))

    out_sum = l1_loss_pallas(pred, target, loss_weight=loss_weight, reduction="sum")
    ref_sum = loss_weight * jnp.sum(jnp.abs(pred - target))

    out_wmean = l1_loss_pallas(pred, target, weight=weight,
                               loss_weight=loss_weight, reduction="mean")
    ref_wmean = loss_weight * jnp.mean(jnp.abs(pred - target) * weight)

    out_none = l1_loss_pallas(pred, target, loss_weight=loss_weight, reduction="none")
    ref_none = loss_weight * jnp.abs(pred - target)

    # Multi-block grid with a masked (ragged) last row-block (block_rows=32, rows=40).
    k4, k5, k6 = jax.random.split(k1, 3)
    p2 = jax.random.normal(k4, (4, 4, 40, 64), dtype=jnp.float32)
    t2 = jax.random.normal(k5, (4, 4, 40, 64), dtype=jnp.float32)
    w2 = jax.random.uniform(k6, (4, 4, 40, 64), dtype=jnp.float32)
    small_blk = 32 * 1024 * 4
    out2 = l1_loss_pallas(p2, t2, reduction="sum", block_bytes=small_blk)
    ref2 = jnp.sum(jnp.abs(p2 - t2))
    out2n = l1_loss_pallas(p2, t2, weight=w2, reduction="none",
                           block_bytes=small_blk)
    ref2n = jnp.abs(p2 - t2) * w2

    # Forced 2-way split with an over-grid clamped block (rows=96 -> 3 blocks, 2 splits).
    p3 = jax.random.normal(k4, (4, 4, 96, 64), dtype=jnp.float32)
    t3 = jax.random.normal(k5, (4, 4, 96, 64), dtype=jnp.float32)
    out3 = l1_loss_pallas(p3, t3, reduction="mean", block_bytes=small_blk,
                          num_splits=2)
    ref3 = jnp.mean(jnp.abs(p3 - t3))

    # Ragged element count (n % 128 != 0): prefix kernel + XLA tail epilogue.
    p4 = jax.random.normal(k4, (2, 3, 7, 9), dtype=jnp.float32)
    t4 = jax.random.normal(k5, (2, 3, 7, 9), dtype=jnp.float32)
    out4 = l1_loss_pallas(p4, t4, reduction="mean")
    ref4 = jnp.mean(jnp.abs(p4 - t4))
    out4n = l1_loss_pallas(p4, t4, reduction="none")
    ref4n = jnp.abs(p4 - t4)

    # bf16 inputs exercise the dtype-aware block sizing / in-kernel f32 cast.
    p5 = pred.astype(jnp.bfloat16)
    t5 = target.astype(jnp.bfloat16)
    out5 = l1_loss_pallas(p5, t5, reduction="mean")
    ref5 = jnp.mean(jnp.abs(p5.astype(jnp.float32) - t5.astype(jnp.float32)))

    jax.block_until_ready((out_mean, out_sum, out_wmean, out_none,
                           out2, out2n, out3, out4, out4n, out5))

    assert jnp.allclose(out_mean, ref_mean, rtol=1e-5, atol=1e-5)
    assert jnp.allclose(out_sum, ref_sum, rtol=1e-5, atol=1e-4)
    assert jnp.allclose(out_wmean, ref_wmean, rtol=1e-5, atol=1e-5)
    assert out_none.shape == (N, C, H, W)
    assert jnp.allclose(out_none, ref_none, rtol=1e-5, atol=1e-6)
    assert jnp.allclose(out2, ref2, rtol=1e-5, atol=1e-3)
    assert out2n.shape == p2.shape
    assert jnp.allclose(out2n, ref2n, rtol=1e-5, atol=1e-6)
    assert jnp.allclose(out3, ref3, rtol=1e-5, atol=1e-5)
    assert jnp.allclose(out4, ref4, rtol=1e-5, atol=1e-5)
    assert out4n.shape == p4.shape
    assert jnp.allclose(out4n, ref4n, rtol=1e-5, atol=1e-6)
    assert jnp.allclose(out5.astype(jnp.float32), ref5, rtol=2e-2, atol=2e-2)

    print("KERNEL_OK")
</pallas_src>

<mosaic_0001>
module attributes {stable_mosaic.version = 11 : i64} {
  func.func @kernel(%arg0: i32, %arg1: i32, %arg2: memref<2x1024xf32, #tpu.memory_space<vmem>>, %arg3: memref<2x1024xf32, #tpu.memory_space<vmem>>, %arg4: memref<8x128xf32, #tpu.memory_space<vmem>>, %arg5: memref<1x1024xf32, #tpu.memory_space<vmem>>) attributes {dimension_semantics = [#tpu.dimension_semantics<parallel>, #tpu.dimension_semantics<arbitrary>], iteration_bounds = array<i64: 1, 1>, scalar_prefetch = 0 : i64, scratch_operands = 1 : i64, tpu.core_type = #tpu.core_type<tc>, window_params = [{transform_indices = @transform_0, window_bounds = array<i64: 2, 1024>}, {transform_indices = @transform_1, window_bounds = array<i64: 2, 1024>}, {transform_indices = @transform_2, window_bounds = array<i64: 8, 128>}]} {
    %c0_i32 = arith.constant 0 : i32
    %0 = arith.cmpi eq, %arg1, %c0_i32 : i32
    %1 = arith.extui %0 : i1 to i32
    %c0_i32_0 = arith.constant 0 : i32
    %2 = arith.cmpi ne, %1, %c0_i32_0 : i32
    scf.if %2 {
      %cst_10 = arith.constant 0.000000e+00 : f32
      %15 = vector.broadcast %cst_10 : f32 to vector<1x1024xf32>
      %c0_11 = arith.constant 0 : index
      %c0_12 = arith.constant 0 : index
      %16 = vector.load %arg5[%c0_11, %c0_12] : memref<1x1024xf32, #tpu.memory_space<vmem>>, vector<1x1024xf32>
      tpu.vector_store %arg5[%c0_11, %c0_12], %15 {strides = array<i32>} : memref<1x1024xf32, #tpu.memory_space<vmem>>, vector<1x1024xf32>,
    } else {
    }
    %c0 = arith.constant 0 : index
    %c0_1 = arith.constant 0 : index
    %3 = vector.load %arg2[%c0, %c0_1] : memref<2x1024xf32, #tpu.memory_space<vmem>>, vector<2x1024xf32>
    %c0_2 = arith.constant 0 : index
    %c0_3 = arith.constant 0 : index
    %4 = vector.load %arg3[%c0_2, %c0_3] : memref<2x1024xf32, #tpu.memory_space<vmem>>, vector<2x1024xf32>
    %5 = arith.subf %3, %4 : vector<2x1024xf32>
    %6 = math.absf %5 : vector<2x1024xf32>
    %c0_4 = arith.constant 0 : index
    %c0_5 = arith.constant 0 : index
    %7 = vector.load %arg5[%c0_4, %c0_5] : memref<1x1024xf32, #tpu.memory_space<vmem>>, vector<1x1024xf32>
    %cst = arith.constant dense<0.000000e+00> : vector<1024xf32>
    %8 = vector.multi_reduction <add>, %6, %cst [0] : vector<2x1024xf32> to vector<1024xf32>
    %9 = vector.shape_cast %8 : vector<1024xf32> to vector<1x1024xf32>
    %10 = arith.addf %7, %9 : vector<1x1024xf32>
    %c0_6 = arith.constant 0 : index
    %c0_7 = arith.constant 0 : index
    %11 = vector.load %arg5[%c0_6, %c0_7] : memref<1x1024xf32, #tpu.memory_space<vmem>>, vector<1x1024xf32>
    tpu.vector_store %arg5[%c0_6, %c0_7], %10 {strides = array<i32>} : memref<1x1024xf32, #tpu.memory_space<vmem>>, vector<1x1024xf32>,
    %c0_i32_8 = arith.constant 0 : i32
    %12 = arith.cmpi eq, %arg1, %c0_i32_8 : i32
    %13 = arith.extui %12 : i1 to i32
    %c0_i32_9 = arith.constant 0 : i32
    %14 = arith.cmpi ne, %13, %c0_i32_9 : i32
    scf.if %14 {
      %c0_10 = arith.constant 0 : index
      %c0_11 = arith.constant 0 : index
      %15 = vector.load %arg5[%c0_10, %c0_11] : memref<1x1024xf32, #tpu.memory_space<vmem>>, vector<1x1024xf32>
      %16 = vector.shape_cast %15 : vector<1x1024xf32> to vector<1x1x1024xf32>
      %cst_12 = arith.constant dense<0.000000e+00> : vector<1xf32>
      %17 = vector.multi_reduction <add>, %16, %cst_12 [1, 2] : vector<1x1x1024xf32> to vector<1xf32>
      %18 = vector.shape_cast %17 : vector<1xf32> to vector<1x1x1xf32>
      %19 = vector.extract %18[0, 0, 0] : f32 from vector<1x1x1xf32>
      %20 = vector.broadcast %19 : f32 to vector<8x128xf32>
      %c0_13 = arith.constant 0 : index
      %c0_14 = arith.constant 0 : index
      %21 = vector.load %arg4[%c0_13, %c0_14] : memref<8x128xf32, #tpu.memory_space<vmem>>, vector<8x128xf32>
      tpu.vector_store %arg4[%c0_13, %c0_14], %20 {strides = array<i32>} : memref<8x128xf32, #tpu.memory_space<vmem>>, vector<8x128xf32>,
    } else {
    }
    return
  }
  func.func @transform_0(%arg0: i32, %arg1: i32) -> (i32, i32) {
    %c1_i32 = arith.constant 1 : i32
    %0 = arith.muli %arg0, %c1_i32 : i32
    %1 = arith.addi %0, %arg1 : i32
    %c0_i32 = arith.constant 0 : i32
    %2 = arith.minsi %1, %c0_i32 : i32
    %c0_i32_0 = arith.constant 0 : i32
    %c0_i32_1 = arith.constant 0 : i32
    return %2, %c0_i32_0 : i32, i32
  }
  func.func @transform_1(%arg0: i32, %arg1: i32) -> (i32, i32) {
    %c1_i32 = arith.constant 1 : i32
    %0 = arith.muli %arg0, %c1_i32 : i32
    %1 = arith.addi %0, %arg1 : i32
    %c0_i32 = arith.constant 0 : i32
    %2 = arith.minsi %1, %c0_i32 : i32
    %c0_i32_0 = arith.constant 0 : i32
    %c0_i32_1 = arith.constant 0 : i32
    return %2, %c0_i32_0 : i32, i32
  }
  func.func @transform_2(%arg0: i32, %arg1: i32) -> (i32, i32) {
    %c0_i32 = arith.constant 0 : i32
    %c0_i32_0 = arith.constant 0 : i32
    return %arg0, %c0_i32 : i32, i32
  }
}

</mosaic_0001>

<bundles_post_ra>
// kernel: tpu_custom_call.1
= control target key start
LH: loop header
LB: loop body
LE: loop exit
PB: predicated region body
PF: predicated region fallthrough
CT: control target
= control target key end

     0   :  { %7 = vsyncpa [#allocation4], 0  ;;  %s451_s0 = inlined_call_operand.hbm [shape: f32[2,1024], index: 0, kind: input, shape index: {}]   ;;  %s452_s1 = inlined_call_operand.hbm [shape: f32[2,1024], index: 1, kind: input, shape index: {}]   ;;  %s453_s2 = inlined_call_operand.hbm [shape: f32[8,128], index: 2, kind: output, shape index: {}]  }
   0x1   :  { %8 = vsyncpa [#allocation7], 0 }
   0x2   :  { %9 = vsyncpa [#allocation5], 0  ;;  %s394_s9 = smov [#allocation3]   ;;  %s395_s11 = smov [#allocation6]  }
   0x3   :  { %s22_s10 = sshll.u32 %s394_s9, 4  ;;  %s38_s12 = sshll.u32 %s395_s11, 4  ;;  %s23_s10 = int_to_ptr.vmem [resolvable:$true] %s22_s10  ;;  %s39_s12 = int_to_ptr.vmem [resolvable:$true] %s38_s12 }
   0x4   :  { %s336_s13 = scalar_lea.vmem %s23_s10, 256  ;;  %p341_p1 = scmp.lt.s32.totalorder %s23_s10, %s23_s10 }
   0x5   :  { %p337_p0 = scmp.ne.s32.totalorder %s23_s10, %s336_s13  ;;  %p342_p2 = scmp.lt.s32.totalorder %s336_s13, %s336_s13 }
   0x7   :  { %p343_p3 = por %p342_p2, %p341_p1 }
   0x9   :  { %p344_p4 = pnand %p343_p3, %p337_p0 }
   0xb   :  { %347 = shalt.err (!%p344_p4)
}
   0xc   :  { %25 = dma.hbm_to_vmem [thread:$0]  %s451_s0, 256, %s23_s10, [#allocation4]  }
   0xd   :  { %s356_s16 = scalar_lea.vmem %s39_s12, 256  ;;  %p361_p6 = scmp.lt.s32.totalorder %s39_s12, %s39_s12 }
   0xe   :  { %p357_p5 = scmp.ne.s32.totalorder %s39_s12, %s356_s16  ;;  %p362_p7 = scmp.lt.s32.totalorder %s356_s16, %s356_s16 }
  0x10   :  { %p363_p8 = por %p362_p7, %p361_p6 }
  0x12   :  { %p364_p9 = pnand %p363_p8, %p357_p5 }
  0x14   :  { %367 = shalt.err (!%p364_p9)
}
  0x15   :  { %41 = dma.hbm_to_vmem [thread:$0]  %s452_s1, 256, %s39_s12, [#allocation7]  }
  0x16   :  { %388 = dma.done.wait [#allocation4], 256  }
  0x17   :  { %389 = vsyncadd [#allocation4], 4294967040 }
  0x18   :  { %390 = dma.done.wait [#allocation7], 256  }
  0x19   :  { %391 = vsyncadd [#allocation7], 4294967040  ;;  %v74_v0 = vlaneseq  ;;  %v396_v1 = vmov 1983009808   ;;  %v59_v5 = vld [vmem:[#allocation3] sm:$0xff]  ;;  %v60_v6 = vld [vmem:[#allocation3 + $0x8] sm:$0xff] }
  0x1a   :  { %v72_v2 = vunpack.c.l.s4 %v396_v1  ;;  %v61_v7 = vld [vmem:[#allocation6] sm:$0xff]  ;;  %v62_v8 = vld [vmem:[#allocation6 + $0x8] sm:$0xff]  ;;  %v397_v13 = vmov 1966171168   ;;  %vm112_vm0 = vcmask 1041408   ;;  %vm274_vm1 = vcmask 1040384  }
  0x1b   :  { %v420_v4 = vshrl.u32 %v74_v0, 7  ;;  %v63_v9 = vsub.f32 %v59_v5, %v61_v7  ;;  %v64_v11 = vsub.f32 %v60_v6, %v62_v8  ;;  %v182_v14 = vunpack.c.l.s4 %v397_v13  ;;  %s398_s0 = smov [#allocation8]  }
  0x1c   :  { %v73_v3 = vunpack.c.0.s8 %v72_v2  ;;  %s307_s1 = sshll.u32 %s398_s0, 4  ;;  %s308_s1 = int_to_ptr.vmem [resolvable:$true] %s307_s1 }
  0x1d   :  { %v65_v12 = vand.u32 2147483647, %v63_v9  ;;  %v66_v15 = vand.u32 2147483647, %v64_v11  ;;  %v183_v23 = vunpack.c.0.s8 %v182_v14  ;;  %s368_s20 = scalar_lea.vmem %s308_s1, 128  ;;  %p373_p11 = scmp.lt.s32.totalorder %s308_s1, %s308_s1 }
  0x1e   :  { %v76_v10 = vsub.s32 %v73_v3, %v420_v4  ;;  %p369_p10 = scmp.ne.s32.totalorder %s308_s1, %s368_s20  ;;  %p374_p12 = scmp.lt.s32.totalorder %s368_s20, %s368_s20 }
  0x1f   :  { %v70_v16 = vcombine.high %v65_v12, %v65_v12  ;;  %v87_v18 = vcombine.high %v66_v15, %v66_v15  ;;  %v186_v11 = vsub.s32 %v183_v23, %v420_v4 }
  0x20   :  { %v77_v17 = vrot.slane %v65_v12, %v76_v10  ;;  %v94_v19 = vrot.slane %v66_v15, %v76_v10  ;;  %p375_p13 = por %p374_p12, %p373_p11 }
  0x21   :  { %v84_v20 = vrot.slane %v70_v16, %v76_v10  ;;  %v101_v24 = vrot.slane %v87_v18, %v76_v10 }
  0x22   :  { %v85_v21 = vcombine.high %v77_v17, %v77_v17  ;;  %v113_v22 = vsel %vm112_vm0, %v77_v17, 0.0  ;;  %v102_v25 = vcombine.high %v94_v19, %v94_v19  ;;  %v141_v27 = vsel %vm112_vm0, %v94_v19, 0.0  ;;  %p376_p0 = pnand %p375_p13, %p369_p10 }
  0x23   :  { %v114_v26 = vrot.slane %v113_v22, 4  ;;  %v86_v28 = vcombine.high %v84_v20, %v84_v20  ;;  %v127_v30 = vsel %vm112_vm0, %v84_v20, 0.0  ;;  %v142_v31 = vrot.slane %v141_v27, 4 }
  0x24   :  { %v120_v29 = vsel %vm112_vm0, %v85_v21, 0.0  ;;  %v103_v32 = vcombine.high %v101_v24, %v101_v24  ;;  %v128_v35 = vrot.slane %v127_v30, 4  ;;  %v148_v38 = vsel %vm112_vm0, %v102_v25, 0.0 }
  0x25   :  { %v115_v33 = vadd.f32 %v114_v26, %v113_v22  ;;  %v121_v34 = vrot.slane %v120_v29, 4  ;;  %v134_v36 = vsel %vm112_vm0, %v86_v28, 0.0  ;;  %v143_v37 = vadd.f32 %v142_v31, %v141_v27 }
  0x26   :  { %v155_v39 = vsel %vm112_vm0, %v101_v24, 0.0  ;;  %v129_v42 = vadd.f32 %v128_v35, %v127_v30  ;;  %v135_v43 = vrot.slane %v134_v36, 4  ;;  %v149_v45 = vrot.slane %v148_v38, 4 }
  0x27   :  { %v116_v40 = vrot.slane %v115_v33, 2  ;;  %v122_v41 = vadd.f32 %v121_v34, %v120_v29  ;;  %v144_v44 = vrot.slane %v143_v37, 2  ;;  %v156_v46 = vrot.slane %v155_v39, 4 }
  0x28   :  { %v162_v47 = vsel %vm112_vm0, %v103_v32, 0.0  ;;  %v130_v50 = vrot.slane %v129_v42, 2  ;;  %v136_v51 = vadd.f32 %v135_v43, %v134_v36  ;;  %v150_v53 = vadd.f32 %v149_v45, %v148_v38 }
  0x29   :  { %v117_v48 = vadd.f32 %v116_v40, %v115_v33  ;;  %v123_v49 = vrot.slane %v122_v41, 2  ;;  %v145_v52 = vadd.f32 %v144_v44, %v143_v37  ;;  %v157_v54 = vadd.f32 %v156_v46, %v155_v39 }
  0x2a   :  { %v163_v55 = vrot.slane %v162_v47, 4  ;;  %v131_v58 = vadd.f32 %v130_v50, %v129_v42  ;;  %v137_v59 = vrot.slane %v136_v51, 2  ;;  %v151_v61 = vrot.slane %v150_v53, 2 }
  0x2b   :  { %v118_v56 = vrot.slane %v117_v48, 1  ;;  %v124_v57 = vadd.f32 %v123_v49, %v122_v41  ;;  %v146_v60 = vrot.slane %v145_v52, 1  ;;  %v158_v62 = vrot.slane %v157_v54, 2 }
  0x2c   :  { %v164_v63 = vadd.f32 %v163_v55, %v162_v47  ;;  %v132_v2 = vrot.slane %v131_v58, 1  ;;  %v138_v3 = vadd.f32 %v137_v59, %v136_v51  ;;  %v152_v5 = vadd.f32 %v151_v61, %v150_v53 }
  0x2d   :  { %v119_v0 = vadd.f32 %v118_v56, %v117_v48  ;;  %v125_v1 = vrot.slane %v124_v57, 1  ;;  %v159_v6 = vadd.f32 %v158_v62, %v157_v54  ;;  %v147_v12 = vadd.f32 %v146_v60, %v145_v52 }
  0x2e   :  { %v165_v7 = vrot.slane %v164_v63, 2  ;;  %v133_v9 = vadd.f32 %v132_v2, %v131_v58  ;;  %v139_v10 = vrot.slane %v138_v3, 1  ;;  %v153_v13 = vrot.slane %v152_v5, 1 }
  0x2f   :  { %v126_v8 = vadd.f32 %v125_v1, %v124_v57  ;;  %v160_v14 = vrot.slane %v159_v6, 1  ;;  %v236_v32 = vsub.s32 0, %v420_v4  ;;  %v240_v34 = vsub.s32 1, %v420_v4 }
  0x30   :  { %v166_v15 = vadd.f32 %v165_v7, %v164_v63  ;;  %v140_v16 = vadd.f32 %v139_v10, %v138_v3  ;;  %v154_v18 = vadd.f32 %v153_v13, %v152_v5  ;;  %v244_v35 = vsub.s32 2, %v420_v4 }
  0x31   :  { %v177_v17 = vcombine.low %v119_v0, %v126_v8  ;;  %v161_v19 = vadd.f32 %v160_v14, %v159_v6  ;;  %v248_v36 = vsub.s32 3, %v420_v4  ;;  %v252_v38 = vsub.s32 4, %v420_v4 }
  0x32   :  { %v167_v20 = vrot.slane %v166_v15, 1  ;;  %v178_v21 = vcombine.low %v133_v9, %v140_v16  ;;  %v179_v25 = vcombine.low %v147_v12, %v154_v18  ;;  %v256_v39 = vsub.s32 5, %v420_v4 }
  0x33   :  { %v187_v22 = vrot.slane %v177_v17, %v186_v11  ;;  %v260_v44 = vsub.s32 6, %v420_v4  ;;  %v264_v51 = vsub.s32 7, %v420_v4 }
  0x34   :  { %v168_v24 = vadd.f32 %v167_v20, %v166_v15  ;;  %v194_v26 = vrot.slane %v178_v21, %v186_v11  ;;  %v201_v28 = vrot.slane %v179_v25, %v186_v11 }
  0x36   :  { %v180_v27 = vcombine.low %v161_v19, %v168_v24  ;;  %v209_v29 = vcombine.low %v187_v22, %v194_v26 }
  0x38   :  { %v208_v30 = vrot.slane %v180_v27, %v186_v11  ;;  %v217_v23 = vrot.slane %v209_v29, %v186_v11 }
  0x3a   :  { %v210_v31 = vcombine.low %v201_v28, %v208_v30 }
  0x3c   :  { %v224_v33 = vrot.slane %v210_v31, %v186_v11 }
  0x3e   :  { %v225_v37 = vcombine.low %v217_v23, %v224_v33 }
  0x40   :  { %v237_v40 = vrot.slane %v225_v37, %v236_v32  ;;  %v241_v41 = vrot.slane %v225_v37, %v240_v34  ;;  %v245_v42 = vrot.slane %v225_v37, %v244_v35  ;;  %v249_v43 = vrot.slane %v225_v37, %v248_v36 }
  0x41   :  { %v253_v45 = vrot.slane %v225_v37, %v252_v38  ;;  %v257_v50 = vrot.slane %v225_v37, %v256_v39  ;;  %v261_v54 = vrot.slane %v225_v37, %v260_v44  ;;  %v265_v57 = vrot.slane %v225_v37, %v264_v51 }
  0x42   :  { %v275_v46 = vsel %vm274_vm1, %v237_v40, 0.0  ;;  %v276_v47 = vsel %vm274_vm1, %v241_v41, 0.0  ;;  %v278_v48 = vsel %vm274_vm1, %v245_v42, 0.0  ;;  %v280_v52 = vsel %vm274_vm1, %v249_v43, 0.0 }
  0x43   :  { %v277_v49 = vadd.f32 %v276_v47, %v275_v46  ;;  %v282_v55 = vsel %vm274_vm1, %v253_v45, 0.0  ;;  %v284_v58 = vsel %vm274_vm1, %v257_v50, 0.0  ;;  %v286_v60 = vsel %vm274_vm1, %v261_v54, 0.0 }
  0x44   :  { %v288_v62 = vsel %vm274_vm1, %v265_v57, 0.0 }
  0x45   :  { %v279_v53 = vadd.f32 %v278_v48, %v277_v49 }
  0x47   :  { %v281_v56 = vadd.f32 %v280_v52, %v279_v53 }
  0x49   :  { %v283_v59 = vadd.f32 %v282_v55, %v281_v56 }
  0x4b   :  { %v285_v61 = vadd.f32 %v284_v58, %v283_v59 }
  0x4d   :  { %v287_v63 = vadd.f32 %v286_v60, %v285_v61 }
  0x4f   :  { %v289_v0 = vadd.f32 %v288_v62, %v287_v63 }
  0x51   :  { %290 = vadd.xlane.f32.xlu0 %v289_v0 }
  0xda   :  { %v291_v4 = vpop.xlane.xlu0 %290 }
  0xdb   :  { %v292_v1 = vrot.slane %v291_v4, 4 }
  0xdd   :  { %v293_v2 = vadd.f32 %v292_v1, %v291_v4 }
  0xdf   :  { %v294_v3 = vrot.slane %v293_v2, 2 }
  0xe1   :  { %v295_v5 = vadd.f32 %v294_v3, %v293_v2 }
  0xe3   :  { %v296_v6 = vrot.slane %v295_v5, 1 }
  0xe5   :  { %v297_v7 = vadd.f32 %v296_v6, %v295_v5 }
  0xe7   :  { %321 = vpush %v297_v7 }
 0x118   :  { %s322_s19 = spop %321 }
 0x119   :  { %v299_v8 = vstv %s322_s19 }
 0x11a   :  { %300 = vst [vmem:[#allocation8] sm:$0xff] %v299_v8 }
 0x11b   :  { %379 = shalt.err (!%p376_p0)
}
 0x11c   :  { %310 = dma.vmem_to_hbm [thread:$0]  %s308_s1, 128, %s453_s2, [#allocation5]  }
 0x11d   :  { %392 = dma.done.wait [#allocation5], 128  }
 0x11e   :  { %393 = vsyncadd [#allocation5], 4294967168 }
 0x11f   :  { %314 = vsyncpa [#allocation4], 1 }
 0x120   :  { %315 = vsyncpa [#allocation7], 1 }
 0x121   :  { %316 = vsyncpa [#allocation5], 1 }

</bundles_post_ra>
